<compile_context>
chip_gen: v7x
topology: tpu7x:2x2x1
jax: 0.10.0
libtpu: 0.0.40
codegen_flags: <defaults>
</compile_context>

<pallas_src>
import jax
import jax.numpy as jnp
from jax import lax
from jax.experimental import pallas as pl
from jax.experimental.pallas import tpu as pltpu

BN_EPS = 1e-5
LANE = 128
VMEM_LIMIT_BYTES = 48 * 1024 * 1024   # safe on v5e/v6e (128 MiB) and v7x (64 MiB)
VMEM_TILE_BUDGET = 28 * 1024 * 1024   # budget used when picking TM


def _round_up(x, m):
    return (x + m - 1) // m * m


# ------------------------------------------------------------------ kernel ---
def _make_kernel(has_res, has_sc, relu):
    """out = relu?( patches @ W + bias [+ xs @ Wsc + bsc] [+ residual] )."""

    def kernel(*refs):
        i = 0
        p_ref = refs[i]; i += 1
        w_ref = refs[i]; i += 1
        b_ref = refs[i]; i += 1
        if has_res:
            r_ref = refs[i]; i += 1
        if has_sc:
            xs_ref = refs[i]; i += 1
            wsc_ref = refs[i]; i += 1
            bsc_ref = refs[i]; i += 1
        o_ref = refs[i]

        acc = jnp.dot(p_ref[...], w_ref[...], preferred_element_type=jnp.float32)
        acc = acc + b_ref[...]                       # folded BN bias (1, Coutp)
        if has_sc:                                   # fused 1x1 shortcut conv + BN
            acc = acc + jnp.dot(xs_ref[...], wsc_ref[...],
                                preferred_element_type=jnp.float32)
            acc = acc + bsc_ref[...]
        if has_res:                                  # identity shortcut
            acc = acc + r_ref[...].astype(jnp.float32)
        if relu:
            acc = jnp.maximum(acc, 0.0)
        o_ref[...] = acc.astype(o_ref.dtype)

    return kernel


def _pick_tm(m128, k, coutp, extra_cols):
    """Largest TM (multiple of 128) whose double-buffered tiles fit the budget."""
    for tm in (1024, 512, 256, 128):
        if tm > m128:
            continue
        byt = 2 * (tm * k * 2)              # bf16 patch tile, double buffered
        byt += 2 * (k * coutp * 2)          # bf16 weight (resident)
        byt += 2 * (coutp * 4) * 2          # bias(es)
        byt += 2 * (tm * extra_cols * 2)    # residual / shortcut input tiles
        byt += 2 * (tm * coutp * 4)         # output / accumulator buffers
        if byt <= VMEM_TILE_BUDGET:
            return tm
    return 128


def _pad2(a, rows, cols, dtype):
    a = a.astype(dtype)
    pr, pc = rows - a.shape[0], cols - a.shape[1]
    if pr or pc:
        a = jnp.pad(a, ((0, pr), (0, pc)))
    return a


def fused_conv_gemm(patches, w_scaled, bias, *, residual=None,
                    sc_input=None, sc_w_scaled=None, sc_bias=None,
                    relu=False, out_dtype=jnp.float32):
    """patches: (M, K), w_scaled: (K, Cout) with BN scale pre-folded -> (M, Cout)."""
    M, K = patches.shape
    Cout = w_scaled.shape[1]
    Coutp = _round_up(Cout, LANE)
    has_res = residual is not None
    has_sc = sc_input is not None

    extra_cols = (Coutp if has_res else 0) + (sc_input.shape[1] if has_sc else 0)
    m128 = _round_up(M, LANE)
    TM = _pick_tm(m128, K, Coutp, extra_cols)
    Mpad = _round_up(M, TM)

    # bf16 data streams, padded to lane-dense / TM-aligned shapes.
    p = _pad2(patches, Mpad, K, jnp.bfloat16)
    w = _pad2(w_scaled, K, Coutp, jnp.bfloat16)
    b = _pad2(bias.reshape(1, Cout), 1, Coutp, jnp.float32)

    inputs = [p, w, b]
    in_specs = [
        pl.BlockSpec((TM, K), lambda i: (i, 0)),       # patch tile
        pl.BlockSpec((K, Coutp), lambda i: (0, 0)),    # full (scaled) weight
        pl.BlockSpec((1, Coutp), lambda i: (0, 0)),    # BN bias
    ]
    if has_res:
        r = _pad2(residual, Mpad, Coutp, jnp.bfloat16)
        inputs.append(r)
        in_specs.append(pl.BlockSpec((TM, Coutp), lambda i: (i, 0)))
    if has_sc:
        Csc = sc_input.shape[1]
        xs = _pad2(sc_input, Mpad, Csc, jnp.bfloat16)
        wsc = _pad2(sc_w_scaled, Csc, Coutp, jnp.bfloat16)
        bsc = _pad2(sc_bias.reshape(1, Cout), 1, Coutp, jnp.float32)
        inputs += [xs, wsc, bsc]
        in_specs += [
            pl.BlockSpec((TM, Csc), lambda i: (i, 0)),     # shortcut input tile
            pl.BlockSpec((Csc, Coutp), lambda i: (0, 0)),  # shortcut weight
            pl.BlockSpec((1, Coutp), lambda i: (0, 0)),    # shortcut BN bias
        ]

    out = pl.pallas_call(
        _make_kernel(has_res, has_sc, relu),
        out_shape=jax.ShapeDtypeStruct((Mpad, Coutp), out_dtype),
        grid=(Mpad // TM,),
        in_specs=in_specs,
        out_specs=pl.BlockSpec((TM, Coutp), lambda i: (i, 0)),
        compiler_params=pltpu.CompilerParams(
            dimension_semantics=("parallel",),
            vmem_limit_bytes=VMEM_LIMIT_BYTES),
    )(*inputs)
    return out[:M, :Cout]


# ------------------------------------------------------------------- glue ----
def _im2col(x_nhwc, ksize, stride, pad):
    """Extract ksize x ksize patches. Returns (N*Ho*Wo, ksize*ksize*C), Ho, Wo."""
    N, H, W, C = x_nhwc.shape
    xp = jnp.pad(x_nhwc, ((0, 0), (pad, pad), (pad, pad), (0, 0)))
    Ho = (H + 2 * pad - ksize) // stride + 1
    Wo = (W + 2 * pad - ksize) // stride + 1
    cols = []
    for kh in range(ksize):
        for kw in range(ksize):
            patch = xp[:, kh:kh + stride * Ho:stride, kw:kw + stride * Wo:stride, :]
            cols.append(patch)
    patches = jnp.concatenate(cols, axis=-1)  # (N, Ho, Wo, kh*kw*C), order (kh, kw, c)
    return patches.reshape(N * Ho * Wo, ksize * ksize * C), Ho, Wo


def _fold_bn(gamma, beta, mean, var):
    scale = gamma / jnp.sqrt(var + BN_EPS)
    bias = beta - mean * scale
    return scale, bias


def _w_to_mat(w_oihw):
    """(Cout, Cin, kh, kw) -> (kh*kw*Cin, Cout), matching im2col (kh, kw, c) order."""
    return jnp.transpose(w_oihw, (2, 3, 1, 0)).reshape(-1, w_oihw.shape[0])


def basic_block_forward(x_nchw, params, stride):
    """Pallas implementation of BasicBlock.forward. Input/output are NCHW."""
    x = jnp.transpose(x_nchw, (0, 2, 3, 1)).astype(jnp.float32)   # -> NHWC
    N, H, W, Cin = x.shape
    planes = params["conv1_w"].shape[0]

    # conv1 -> bn1 -> relu   (BN scale folded into weights, bf16 intermediate)
    s1, b1 = _fold_bn(params["bn1_gamma"], params["bn1_beta"],
                      params["bn1_mean"], params["bn1_var"])
    w1 = _w_to_mat(params["conv1_w"]) * s1[None, :]
    p1, Ho, Wo = _im2col(x, 3, stride, 1)
    out1 = fused_conv_gemm(p1, w1, b1, relu=True, out_dtype=jnp.bfloat16)
    out1_img = out1.reshape(N, Ho, Wo, planes)

    # conv2 -> bn2 -> (+shortcut) -> relu, all in a single fused kernel call.
    s2, b2 = _fold_bn(params["bn2_gamma"], params["bn2_beta"],
                      params["bn2_mean"], params["bn2_var"])
    w2 = _w_to_mat(params["conv2_w"]) * s2[None, :]
    p2, _, _ = _im2col(out1_img, 3, 1, 1)

    if stride != 1 or Cin != planes:
        # option 'B' shortcut: 1x1 conv + BN, fused into the conv2 kernel.
        ss, bs = _fold_bn(params["sc_gamma"], params["sc_beta"],
                          params["sc_mean"], params["sc_var"])
        wsc = _w_to_mat(params["sc_w"]) * ss[None, :]
        xs = x[:, ::stride, ::stride, :].reshape(N * Ho * Wo, Cin)
        out2 = fused_conv_gemm(p2, w2, b2, sc_input=xs, sc_w_scaled=wsc,
                               sc_bias=bs, relu=True)
    else:
        short = x.reshape(N * H * W, Cin)
        out2 = fused_conv_gemm(p2, w2, b2, residual=short, relu=True)

    out = out2.reshape(N, Ho, Wo, planes)
    return jnp.transpose(out, (0, 3, 1, 2))   # back to NCHW


# ------------------------------------------------------------- reference -----
def _ref_forward(x, params, stride):
    def conv(x, w, s, pad):
        return lax.conv_general_dilated(
            x, w, (s, s), ((pad, pad), (pad, pad)),
            dimension_numbers=("NCHW", "OIHW", "NCHW"))

    def bn(x, g, b, m, v):
        g, b, m, v = (a[None, :, None, None] for a in (g, b, m, v))
        return (x - m) / jnp.sqrt(v + BN_EPS) * g + b

    out = jax.nn.relu(bn(conv(x, params["conv1_w"], stride, 1),
                         params["bn1_gamma"], params["bn1_beta"],
                         params["bn1_mean"], params["bn1_var"]))
    out = bn(conv(out, params["conv2_w"], 1, 1),
             params["bn2_gamma"], params["bn2_beta"],
             params["bn2_mean"], params["bn2_var"])
    in_planes, planes = x.shape[1], params["conv1_w"].shape[0]
    if stride != 1 or in_planes != planes:
        sc = bn(conv(x, params["sc_w"], stride, 0),
                params["sc_gamma"], params["sc_beta"],
                params["sc_mean"], params["sc_var"])
    else:
        sc = x
    return jax.nn.relu(out + sc)


# ----------------------------------------------------------------- main ------
if __name__ == "__main__":
    key = jax.random.PRNGKey(0)
    N, in_planes, planes, H, W, stride = 2, 4, 8, 16, 16, 2

    ks = jax.random.split(key, 12)
    params = {
        "conv1_w": jax.random.normal(ks[0], (planes, in_planes, 3, 3), jnp.float32) * 0.1,
        "bn1_gamma": jax.random.uniform(ks[1], (planes,), jnp.float32, 0.5, 1.5),
        "bn1_beta": jax.random.normal(ks[2], (planes,), jnp.float32) * 0.1,
        "bn1_mean": jax.random.normal(ks[3], (planes,), jnp.float32) * 0.1,
        "bn1_var": jax.random.uniform(ks[4], (planes,), jnp.float32, 0.5, 1.5),
        "conv2_w": jax.random.normal(ks[5], (planes, planes, 3, 3), jnp.float32) * 0.1,
        "bn2_gamma": jax.random.uniform(ks[6], (planes,), jnp.float32, 0.5, 1.5),
        "bn2_beta": jax.random.normal(ks[7], (planes,), jnp.float32) * 0.1,
        "bn2_mean": jax.random.normal(ks[8], (planes,), jnp.float32) * 0.1,
        "bn2_var": jax.random.uniform(ks[9], (planes,), jnp.float32, 0.5, 1.5),
        # option 'B' shortcut (stride!=1 or in_planes!=planes)
        "sc_w": jax.random.normal(ks[10], (planes, in_planes, 1, 1), jnp.float32) * 0.1,
        "sc_gamma": jnp.ones((planes,), jnp.float32),
        "sc_beta": jnp.zeros((planes,), jnp.float32),
        "sc_mean": jnp.zeros((planes,), jnp.float32),
        "sc_var": jnp.ones((planes,), jnp.float32),
    }

    x = jax.random.normal(ks[11], (N, in_planes, H, W), jnp.float32)

    out = jax.block_until_ready(basic_block_forward(x, params, stride))
    ref = jax.block_until_ready(_ref_forward(x, params, stride))

    assert out.shape == (N, planes, H // stride, W // stride), out.shape
    # bf16 data path -> compare with a bf16-appropriate tolerance.
    err = float(jnp.max(jnp.abs(out - ref)))
    tol = 0.03 * float(jnp.max(jnp.abs(ref))) + 0.02
    assert err < tol, (err, tol)
    print("KERNEL_OK")
</pallas_src>

<mosaic_0001>
module attributes {stable_mosaic.version = 11 : i64} {
  func.func @kernel(%arg0: i32, %arg1: memref<128x36xbf16, #tpu.memory_space<vmem>>, %arg2: memref<36x128xbf16, #tpu.memory_space<vmem>>, %arg3: memref<1x128xf32, #tpu.memory_space<vmem>>, %arg4: memref<128x128xbf16, #tpu.memory_space<vmem>>) attributes {dimension_semantics = [#tpu.dimension_semantics<parallel>], iteration_bounds = array<i64: 1>, scalar_prefetch = 0 : i64, scratch_operands = 0 : i64, tpu.core_type = #tpu.core_type<tc>, window_params = [{transform_indices = @transform_0, window_bounds = array<i64: 128, 36>}, {pipeline_mode = #tpu.pipeline_mode<synchronous>, transform_indices = @transform_1, window_bounds = array<i64: 36, 128>}, {pipeline_mode = #tpu.pipeline_mode<synchronous>, transform_indices = @transform_2, window_bounds = array<i64: 1, 128>}, {transform_indices = @transform_3, window_bounds = array<i64: 128, 128>}]} {
    %c0 = arith.constant 0 : index
    %c0_0 = arith.constant 0 : index
    %0 = vector.load %arg1[%c0, %c0_0] : memref<128x36xbf16, #tpu.memory_space<vmem>>, vector<128x36xbf16>
    %c0_1 = arith.constant 0 : index
    %c0_2 = arith.constant 0 : index
    %1 = vector.load %arg2[%c0_1, %c0_2] : memref<36x128xbf16, #tpu.memory_space<vmem>>, vector<36x128xbf16>
    %cst = arith.constant dense<0.000000e+00> : vector<128x128xf32>
    %2 = tpu.matmul %0, %1, %cst {dimension_numbers = #tpu.dot_dimension_numbers<[1], [0], [0], [1], [0, 0, 1, 1], [], []>} : vector<128x36xbf16>, vector<36x128xbf16>, vector<128x128xf32> -> vector<128x128xf32>
    %c0_3 = arith.constant 0 : index
    %c0_4 = arith.constant 0 : index
    %3 = vector.load %arg3[%c0_3, %c0_4] : memref<1x128xf32, #tpu.memory_space<vmem>>, vector<1x128xf32>
    %4 = vector.broadcast %3 : vector<1x128xf32> to vector<128x128xf32>
    %5 = arith.addf %2, %4 : vector<128x128xf32>
    %cst_5 = arith.constant 0.000000e+00 : f32
    %6 = vector.broadcast %cst_5 : f32 to vector<128x128xf32>
    %7 = arith.maximumf %5, %6 : vector<128x128xf32>
    %8 = arith.truncf %7 : vector<128x128xf32> to vector<128x128xbf16>
    %c0_6 = arith.constant 0 : index
    %c0_7 = arith.constant 0 : index
    %9 = vector.load %arg4[%c0_6, %c0_7] : memref<128x128xbf16, #tpu.memory_space<vmem>>, vector<128x128xbf16>
    tpu.vector_store %arg4[%c0_6, %c0_7], %8 {strides = array<i32>} : memref<128x128xbf16, #tpu.memory_space<vmem>>, vector<128x128xbf16>,
    return
  }
  func.func @transform_0(%arg0: i32) -> (i32, i32) {
    %c0_i32 = arith.constant 0 : i32
    %c0_i32_0 = arith.constant 0 : i32
    return %arg0, %c0_i32 : i32, i32
  }
  func.func @transform_1(%arg0: i32) -> (i32, i32) {
    %c0_i32 = arith.constant 0 : i32
    %c0_i32_0 = arith.constant 0 : i32
    %c0_i32_1 = arith.constant 0 : i32
    return %c0_i32, %c0_i32_0 : i32, i32
  }
  func.func @transform_2(%arg0: i32) -> (i32, i32) {
    %c0_i32 = arith.constant 0 : i32
    %c0_i32_0 = arith.constant 0 : i32
    %c0_i32_1 = arith.constant 0 : i32
    return %c0_i32, %c0_i32_0 : i32, i32
  }
  func.func @transform_3(%arg0: i32) -> (i32, i32) {
    %c0_i32 = arith.constant 0 : i32
    %c0_i32_0 = arith.constant 0 : i32
    return %arg0, %c0_i32 : i32, i32
  }
}

</mosaic_0001>

<bundles_post_ra>
// kernel: tpu_custom_call.1
= control target key start
LH: loop header
LB: loop body
LE: loop exit
PB: predicated region body
PF: predicated region fallthrough
CT: control target
= control target key end

     0   :  { %vm99_vm0 = vcmask 293888   ;;  %vm124_vm1 = vcmask 1041408   ;;  %s594_s0 = inlined_call_operand.vmem [shape: bf16[128,36], index: 0, kind: input, shape index: {}]   ;;  %s595_s1 = inlined_call_operand.vmem [shape: bf16[36,128], index: 1, kind: input, shape index: {}]   ;;  %s596_s2 = inlined_call_operand.vmem [shape: f32[1,128], index: 2, kind: input, shape index: {}]   ;;  %s597_s3 = inlined_call_operand.hbm [shape: bf16[128,128], index: 3, kind: output, shape index: {}]  }
   0x1   :  { %v480_v0 = vld [vmem:[%s595_s1] sm:$0xff]   ;;  %v481_v1 = vld [vmem:[%s595_s1 + $0x8] sm:$0xff]   ;;  %v482_v2 = vld [vmem:[%s595_s1 + $0x10] ss:$0 sps:$4 sm:$0x33]  }
   0x2   :  { %447 = vmatprep.subr.bf16.mxu0 %v480_v0  ;;  %469 = vmatprep.subr.bf16.mxu1 %v480_v0  ;;  %v483_v3 = vld [vmem:[%s594_s0] sm:$0xff]   ;;  %v126_v5 = vsel %vm124_vm1, %v482_v2, 0  ;;  %v485_v6 = vld [vmem:[%s594_s0 + $0x8] sm:$0xff]  }
   0x3   :  { %448 = vmatpush3.bf16.msra.mxu0 %v480_v0  ;;  %472 = vmatpush3.bf16.msra.mxu1 %v480_v0  ;;  %v484_v4 = vld [vmem:[%s594_s0 + $0x20] sm:$0xff]   ;;  %v486_v7 = vld [vmem:[%s594_s0 + $0x28] sm:$0xff]  }
   0x4   :  { %449 = vmatprep.subr.bf16.mxu0 %v481_v1  ;;  %470 = vmatprep.subr.bf16.mxu1 %v481_v1 }
   0x5   :  { %453 = vmatprep.mubr.msk.bf16.mxu0 %vm99_vm0, %v483_v3  ;;  %461 = vmatprep.mubr.msk.bf16.mxu1 %vm99_vm0, %v484_v4 }
   0x7   :  { %450 = vmatpush3.bf16.msra.mxu0 %v481_v1  ;;  %473 = vmatpush3.bf16.msra.mxu1 %v481_v1 }
   0x8   :  { %475 = vmatprep.subr.msk.bf16.mxu0 %vm124_vm1, %v482_v2  ;;  %476 = vmatprep.subr.msk.bf16.mxu1 %vm124_vm1, %v482_v2 }
   0x9   :  { %8 = vsyncpa [#allocation3], 0  ;;  %v487_v8 = vld [vmem:[%s594_s0 + $0x10] sm:$0xff]   ;;  %v489_v10 = vld [vmem:[%s594_s0 + $0x18] sm:$0xff]  }
   0xa   :  { %v488_v9 = vld [vmem:[%s594_s0 + $0x30] sm:$0xff]   ;;  %v490_v11 = vld [vmem:[%s594_s0 + $0x38] sm:$0xff]   ;;  %v337_v12 = vld [vmem:[%s596_s2] ss:$0 sm:$0xff]  ;;  %s515_s0 = smov [#allocation2]  }
   0xb   :  { %452 = vmatpush3.bf16.msra.mxu0 %v126_v5  ;;  %474 = vmatpush3.bf16.msra.mxu1 %v126_v5  ;;  %s326_s2 = sshll.u32 %s515_s0, 4  ;;  %s327_s2 = int_to_ptr.vmem [resolvable:$true] %s326_s2 }
   0xc   :  { %s491_s8 = scalar_lea.vmem %s327_s2, 1024  ;;  %p496_p1 = scmp.lt.s32.totalorder %s327_s2, %s327_s2 }
   0xd   :  { %p492_p0 = scmp.ne.s32.totalorder %s327_s2, %s491_s8  ;;  %p497_p2 = scmp.lt.s32.totalorder %s491_s8, %s491_s8 }
   0xe   :  { %454 = vmatmul.mubr.msk.bf16.vlgmr.msra.gmra.mrb[0].mxu0 %vm99_vm0, %v485_v6  ;;  %462 = vmatmul.mubr.msk.bf16.vlgmr.msra.gmra.mrb[0].mxu1 %vm99_vm0, %v486_v7 }
   0xf   :  { %457 = vmatprep.mubr.msk.bf16.mxu0 %vm99_vm0, %v487_v8  ;;  %465 = vmatprep.mubr.msk.bf16.mxu1 %vm99_vm0, %v488_v9  ;;  %p498_p3 = por %p497_p2, %p496_p1 }
  0x11   :  { %p499_p4 = pnand %p498_p3, %p492_p0 }
  0x16   :  { %458 = vmatmul.mubr.msk.bf16.gmra.mrb[4].mxu0 %vm99_vm0, %v489_v10  ;;  %466 = vmatmul.mubr.msk.bf16.gmra.mrb[4].mxu1 %vm99_vm0, %v490_v11 }
  0xe1   :  { %v455_v13 = vpop.f32.mrb[0].mxu0  ;;  %v463_v14 = vpop.f32.mrb[0].mxu1 }
  0xe2   :  { %v171_v15 = vadd.f32 %v455_v13, %v337_v12  ;;  %v203_v16 = vadd.f32 %v463_v14, %v337_v12  ;;  %v162_v17 = vpop.f32.mrb[1].mxu0  ;;  %v194_v18 = vpop.f32.mrb[1].mxu1 }
  0xe3   :  { %v163_v19 = vadd.f32 %v337_v12, %v162_v17  ;;  %v195_v20 = vadd.f32 %v337_v12, %v194_v18  ;;  %v456_v21 = vpop.f32.mrb[2].mxu0  ;;  %v464_v22 = vpop.f32.mrb[2].mxu1 }
  0xe4   :  { %v174_v23 = vadd.f32 %v456_v21, %v337_v12  ;;  %v206_v24 = vadd.f32 %v464_v22, %v337_v12  ;;  %v165_v25 = vpop.f32.mrb[3].mxu0  ;;  %v197_v26 = vpop.f32.mrb[3].mxu1  ;;  %v227_v29 = vmax.f32 %v171_v15, 0.0  ;;  %v235_v30 = vmax.f32 %v203_v16, 0.0 }
  0xe5   :  { %v166_v27 = vadd.f32 %v337_v12, %v165_v25  ;;  %v198_v28 = vadd.f32 %v337_v12, %v197_v26  ;;  %v225_v33 = vmax.f32 %v163_v19, 0.0  ;;  %v233_v34 = vmax.f32 %v195_v20, 0.0 }
  0xe6   :  { %v228_v31 = vmax.f32 %v174_v23, 0.0  ;;  %v236_v32 = vmax.f32 %v206_v24, 0.0 }
  0xe7   :  { %v226_v35 = vmax.f32 %v166_v27, 0.0  ;;  %v234_v36 = vmax.f32 %v198_v28, 0.0 }
  0xe8   :  { %v397_v37 = vpack.c.bf16 %v228_v31, %v227_v29  ;;  %v417_v38 = vpack.c.bf16 %v236_v32, %v235_v30 }
  0xe9   :  { %v392_v39 = vpack.c.bf16 %v226_v35, %v225_v33  ;;  %v412_v40 = vpack.c.bf16 %v234_v36, %v233_v34  ;;  %v459_v41 = vpop.f32.mrb[4].mxu0  ;;  %v467_v42 = vpop.f32.mrb[4].mxu1 }
  0xea   :  { %429 = vst [vmem:[#allocation2 + $0x8] sm:$0xff] %v397_v37   ;;  %433 = vst [vmem:[#allocation2 + $0x28] sm:$0xff] %v417_v38   ;;  %v187_v43 = vadd.f32 %v459_v41, %v337_v12  ;;  %v219_v44 = vadd.f32 %v467_v42, %v337_v12  ;;  %v178_v45 = vpop.f32.mrb[5].mxu0  ;;  %v210_v46 = vpop.f32.mrb[5].mxu1 }
  0xeb   :  { %393 = vst [vmem:[#allocation2] sm:$0xff] %v392_v39   ;;  %432 = vst [vmem:[#allocation2 + $0x20] sm:$0xff] %v412_v40   ;;  %v179_v47 = vadd.f32 %v337_v12, %v178_v45  ;;  %v211_v48 = vadd.f32 %v337_v12, %v210_v46  ;;  %v460_v49 = vpop.f32.mrb[6].mxu0  ;;  %v468_v50 = vpop.f32.mrb[6].mxu1 }
  0xec   :  { %v190_v51 = vadd.f32 %v460_v49, %v337_v12  ;;  %v222_v52 = vadd.f32 %v468_v50, %v337_v12  ;;  %v181_v53 = vpop.f32.mrb[7].mxu0  ;;  %v213_v54 = vpop.f32.mrb[7].mxu1  ;;  %v231_v57 = vmax.f32 %v187_v43, 0.0  ;;  %v239_v58 = vmax.f32 %v219_v44, 0.0 }
  0xed   :  { %v182_v55 = vadd.f32 %v337_v12, %v181_v53  ;;  %v214_v56 = vadd.f32 %v337_v12, %v213_v54  ;;  %v229_v61 = vmax.f32 %v179_v47, 0.0  ;;  %v237_v62 = vmax.f32 %v211_v48, 0.0 }
  0xee   :  { %v232_v59 = vmax.f32 %v190_v51, 0.0  ;;  %v240_v60 = vmax.f32 %v222_v52, 0.0 }
  0xef   :  { %v230_v63 = vmax.f32 %v182_v55, 0.0  ;;  %v238_v0 = vmax.f32 %v214_v56, 0.0 }
  0xf0   :  { %v407_v1 = vpack.c.bf16 %v232_v59, %v231_v57  ;;  %v427_v2 = vpack.c.bf16 %v240_v60, %v239_v58 }
  0xf1   :  { %v402_v3 = vpack.c.bf16 %v230_v63, %v229_v61  ;;  %v422_v4 = vpack.c.bf16 %v238_v0, %v237_v62 }
  0xf2   :  { %431 = vst [vmem:[#allocation2 + $0x18] sm:$0xff] %v407_v1   ;;  %435 = vst [vmem:[#allocation2 + $0x38] sm:$0xff] %v427_v2  }
  0xf3   :  { %430 = vst [vmem:[#allocation2 + $0x10] sm:$0xff] %v402_v3   ;;  %434 = vst [vmem:[#allocation2 + $0x30] sm:$0xff] %v422_v4  }
  0xf4   :  { %502 = shalt.err (!%p499_p4)
}
  0xf5   :  { %s503_s11 = scalar_lea.hbm %s597_s3, 1024 }
  0xf6   :  { %p504_p5 = scmp.ne.s32.totalorder %s597_s3, %s503_s11  ;;  %p507_p6 = scmp.lt.u32.totalorder %s503_s11, %s597_s3 }
  0xf8   :  { %p509_p7 = pnand %p507_p6, %p504_p5 }
  0xfa   :  { %512 = shalt.err (!%p509_p7)
}
  0xfb   :  { %s516_s16 = smov 64   ;;  %s517_s17 = smov 4  }
  0xfc   :  { %332 = dma.vmem_to_hbm [thread:$0]  %s327_s2, 1024, %s597_s3, [#allocation3], %s516_s16, %s516_s16, %s517_s17  }
  0xfd   :  { %513 = dma.done.wait [#allocation3], 1024  }
  0xfe   :  { %514 = vsyncadd [#allocation3], 4294966272 }
  0xff   :  { %336 = vsyncpa [#allocation3], 1 }

</bundles_post_ra>
